<compile_context>
chip_gen: v6e
topology: v6e:2x2x1
jax: 0.10.0
libtpu: 0.0.40
codegen_flags: <defaults>
</compile_context>

<pallas_src>
import jax
import jax.numpy as jnp
import numpy as np
from jax.experimental import pallas as pl
from jax.experimental.pallas import tpu as pltpu

# ---- synthetic "args" (small, deterministic) --------------------------------
EPISODES = 2
STEPS = 8
WHEELS_JOINTS_SHAPE = 16        # args.wheels_joints_shape
ENCODE_SIZE = 32                # args.wheels_joints_encode_size


def _round_up(x, m):
    return ((x + m - 1) // m) * m


# ------------------------------ Pallas kernel --------------------------------
def wheels_joints_in_kernel(x_ref, wb_ref, alpha_ref, out_ref):
    # Linear with bias folded in: (tm, IN+1) @ (IN+1, OUT).  The last column of
    # x is all ones, the last row of wb is the bias.
    a = jnp.dot(x_ref[...], wb_ref[...], preferred_element_type=jnp.float32)
    # PReLU with a single shared alpha (scalar read from SMEM).
    alpha = alpha_ref[0]
    out_ref[...] = jnp.where(a > 0.0, a, alpha * a)


# ------------------------------ Python wrapper --------------------------------
def wheels_joints_in_forward(wheels_joints, w, b, alpha):
    E, S, IN = wheels_joints.shape
    OUT = w.shape[1]
    B = E * S

    # model_start ('lin'): flatten (E, S, IN) -> (B, IN).  Pure layout plumbing.
    x2d = wheels_joints.reshape(B, IN).astype(jnp.float32)

    # Fold the bias into the weight slab (one weight DMA instead of two).
    wb = jnp.concatenate([w, b.reshape(1, OUT)], axis=0)          # (IN+1, OUT)
    x_aug = jnp.concatenate([x2d, jnp.ones((B, 1), jnp.float32)], axis=1)  # (B, IN+1)
    K = IN + 1

    # Row-tiled grid over the batch.  At scale use >=512-row tiles (~85% of the
    # HBM roofline measured); at tiny B a single full-size tile (grid of 1).
    # Padded rows are zeros -> zero output rows, sliced off below.
    tm = 512 if B >= 512 else _round_up(B, 8)
    B_pad = _round_up(B, tm)
    if B_pad != B:
        x_aug = jnp.pad(x_aug, ((0, B_pad - B), (0, 0)))
    grid = (B_pad // tm,)

    cost = pl.CostEstimate(
        flops=2 * B_pad * K * OUT,
        transcendentals=0,
        bytes_accessed=4 * (B_pad * K + K * OUT + B_pad * OUT),
    )

    out2d = pl.pallas_call(
        wheels_joints_in_kernel,
        out_shape=jax.ShapeDtypeStruct((B_pad, OUT), jnp.float32),
        grid=grid,
        in_specs=[
            pl.BlockSpec((tm, K), lambda i: (i, 0)),              # x rows per tile
            pl.BlockSpec((K, OUT), lambda i: (0, 0)),             # weights, replicated
            pl.BlockSpec(memory_space=pltpu.MemorySpace.SMEM),    # alpha scalar
        ],
        out_specs=pl.BlockSpec((tm, OUT), lambda i: (i, 0)),
        compiler_params=pltpu.CompilerParams(
            dimension_semantics=("parallel",),                    # v7x: 2 TCs split batch
        ),
        cost_estimate=cost,
    )(x_aug, wb, alpha)

    # model_end ('lin'): (B, OUT) -> (E, S, OUT).
    return out2d[:B].reshape(E, S, OUT)


# ------------------------------ Pure-JAX reference ----------------------------
def wheels_joints_in_reference(wheels_joints, w, b, alpha):
    E, S, IN = wheels_joints.shape
    x = wheels_joints.reshape(E * S, IN).astype(jnp.float32)
    a = x @ w + b
    a = jnp.where(a > 0.0, a, alpha[0] * a)
    return a.reshape(E, S, w.shape[1])


# ------------------------------ Parameter init ---------------------------------
def init_params(key):
    k_w, k_b = jax.random.split(key)
    scale = 0.1
    # Stored as (IN, OUT); equivalent to PyTorch's (OUT, IN) weight transposed.
    w = scale * jax.random.normal(k_w, (WHEELS_JOINTS_SHAPE, ENCODE_SIZE),
                                  jnp.float32)
    b = scale * jax.random.normal(k_b, (1, ENCODE_SIZE), jnp.float32)
    alpha = jnp.full((1,), 0.25, jnp.float32)                     # PReLU default
    return w, b, alpha


if __name__ == "__main__":
    key = jax.random.PRNGKey(0)
    pkey, xkey = jax.random.split(key)
    w, b, alpha = init_params(pkey)
    x = jax.random.normal(xkey, (EPISODES, STEPS, WHEELS_JOINTS_SHAPE),
                          jnp.float32)

    out = jax.block_until_ready(wheels_joints_in_forward(x, w, b, alpha))
    ref = jax.block_until_ready(wheels_joints_in_reference(x, w, b, alpha))

    assert out.shape == (EPISODES, STEPS, ENCODE_SIZE)
    assert np.allclose(np.asarray(out), np.asarray(ref), atol=1e-5, rtol=1e-5), \
        f"max abs diff {np.max(np.abs(np.asarray(out) - np.asarray(ref)))}"

    print("KERNEL_OK")
</pallas_src>

<mosaic_0001>
module attributes {stable_mosaic.version = 11 : i64} {
  func.func @wheels_joints_in_kernel(%arg0: i32, %arg1: memref<16x17xf32, #tpu.memory_space<vmem>>, %arg2: memref<17x32xf32, #tpu.memory_space<vmem>>, %arg3: memref<1xf32, #tpu.memory_space<smem>>, %arg4: memref<16x32xf32, #tpu.memory_space<vmem>>) attributes {dimension_semantics = [#tpu.dimension_semantics<parallel>], iteration_bounds = array<i64: 1>, scalar_prefetch = 0 : i64, scratch_operands = 0 : i64, tpu.core_type = #tpu.core_type<tc>, window_params = [{transform_indices = @transform_0, window_bounds = array<i64: 16, 17>}, {pipeline_mode = #tpu.pipeline_mode<synchronous>, transform_indices = @transform_1, window_bounds = array<i64: 17, 32>}, {transform_indices = @transform_2, window_bounds = array<i64: 1>}, {transform_indices = @transform_3, window_bounds = array<i64: 16, 32>}]} {
    %c0 = arith.constant 0 : index
    %c0_0 = arith.constant 0 : index
    %0 = vector.load %arg1[%c0, %c0_0] : memref<16x17xf32, #tpu.memory_space<vmem>>, vector<16x17xf32>
    %c0_1 = arith.constant 0 : index
    %c0_2 = arith.constant 0 : index
    %1 = vector.load %arg2[%c0_1, %c0_2] : memref<17x32xf32, #tpu.memory_space<vmem>>, vector<17x32xf32>
    %cst = arith.constant dense<0.000000e+00> : vector<16x32xf32>
    %2 = tpu.matmul %0, %1, %cst {dimension_numbers = #tpu.dot_dimension_numbers<[1], [0], [0], [1], [0, 0, 1, 1], [], []>} : vector<16x17xf32>, vector<17x32xf32>, vector<16x32xf32> -> vector<16x32xf32>
    %c0_3 = arith.constant 0 : index
    %3 = memref.load %arg3[%c0_3] : memref<1xf32, #tpu.memory_space<smem>>
    %cst_4 = arith.constant 0.000000e+00 : f32
    %4 = vector.broadcast %cst_4 : f32 to vector<16x32xf32>
    %5 = arith.cmpf ogt, %2, %4 : vector<16x32xf32>
    %6 = vector.broadcast %3 : f32 to vector<16x32xf32>
    %7 = arith.mulf %6, %2 : vector<16x32xf32>
    %8 = arith.select %5, %2, %7 : vector<16x32xi1>, vector<16x32xf32>
    %c0_5 = arith.constant 0 : index
    %c0_6 = arith.constant 0 : index
    %9 = vector.load %arg4[%c0_5, %c0_6] : memref<16x32xf32, #tpu.memory_space<vmem>>, vector<16x32xf32>
    tpu.vector_store %arg4[%c0_5, %c0_6], %8 {strides = array<i32>} : memref<16x32xf32, #tpu.memory_space<vmem>>, vector<16x32xf32>,
    return
  }
  func.func @transform_0(%arg0: i32) -> (i32, i32) {
    %c0_i32 = arith.constant 0 : i32
    %c0_i32_0 = arith.constant 0 : i32
    return %arg0, %c0_i32 : i32, i32
  }
  func.func @transform_1(%arg0: i32) -> (i32, i32) {
    %c0_i32 = arith.constant 0 : i32
    %c0_i32_0 = arith.constant 0 : i32
    %c0_i32_1 = arith.constant 0 : i32
    return %c0_i32, %c0_i32_0 : i32, i32
  }
  func.func @transform_2(%arg0: i32) -> i32 {
    %c0_i32 = arith.constant 0 : i32
    %c0_i32_0 = arith.constant 0 : i32
    return %c0_i32 : i32
  }
  func.func @transform_3(%arg0: i32) -> (i32, i32) {
    %c0_i32 = arith.constant 0 : i32
    %c0_i32_0 = arith.constant 0 : i32
    return %arg0, %c0_i32 : i32, i32
  }
}

</mosaic_0001>

<bundles_post_ra>
// kernel: tpu_custom_call.1
= control target key start
LH: loop header
LB: loop body
LE: loop exit
PB: predicated region body
PF: predicated region fallthrough
CT: control target
= control target key end

     0   :  { %9 = vsyncpa [#allocation4], 0  ;;  %s298_s0 = inlined_call_operand.hbm [shape: f32[16,17], index: 0, kind: input, shape index: {}]   ;;  %s299_s1 = inlined_call_operand.hbm [shape: f32[17,32], index: 1, kind: input, shape index: {}]   ;;  %s300_s2 = inlined_call_operand.<no memory space> [shape: f32[1], index: 2, kind: input, shape index: {}]   ;;  %s301_s3 = inlined_call_operand.hbm [shape: f32[16,32], index: 3, kind: output, shape index: {}]  }
   0x1   :  { %10 = vsyncpa [#allocation7], 0 }
   0x2   :  { %11 = vsyncpa [#allocation5], 0  ;;  %s252_s12 = smov [#allocation3]  }
   0x3   :  { %s17_s13 = sshll.u32 %s252_s12, 4  ;;  %s18_s13 = int_to_ptr.vmem [resolvable:$true] %s17_s13 }
   0x4   :  { %s194_s14 = scalar_lea.vmem %s18_s13, 256  ;;  %p199_p1 = scmp.lt.s32.totalorder %s18_s13, %s18_s13 }
   0x5   :  { %p195_p0 = scmp.ne.s32.totalorder %s18_s13, %s194_s14  ;;  %p200_p2 = scmp.lt.s32.totalorder %s194_s14, %s194_s14 }
   0x7   :  { %p201_p3 = por %p200_p2, %p199_p1 }
   0x9   :  { %p202_p4 = pnand %p201_p3, %p195_p0 }
   0xb   :  { %205 = shalt.err (!%p202_p4)
}
   0xc   :  { %s253_s15 = smov 128   ;;  %s254_s16 = smov 8  }
   0xd   :  { %23 = dma.hbm_to_vmem [thread:$0]  %s298_s0, 256, %s18_s13, [#allocation4], %s253_s15, %s253_s15, %s254_s16  }
   0xe   :  { %s255_s19 = smov [#allocation6]  }
   0xf   :  { %s29_s20 = sshll.u32 %s255_s19, 4  ;;  %s30_s20 = int_to_ptr.vmem [resolvable:$true] %s29_s20 }
  0x10   :  { %s214_s21 = scalar_lea.vmem %s30_s20, 384  ;;  %p219_p6 = scmp.lt.s32.totalorder %s30_s20, %s30_s20 }
  0x11   :  { %p215_p5 = scmp.ne.s32.totalorder %s30_s20, %s214_s21  ;;  %p220_p7 = scmp.lt.s32.totalorder %s214_s21, %s214_s21 }
  0x13   :  { %p221_p8 = por %p220_p7, %p219_p6 }
  0x15   :  { %p222_p9 = pnand %p221_p8, %p215_p5 }
  0x17   :  { %225 = shalt.err (!%p222_p9)
}
  0x18   :  { %35 = dma.hbm_to_vmem [thread:$0]  %s299_s1, 384, %s30_s20, [#allocation7], %s253_s15, %s253_s15, %s254_s16  }
  0x19   :  { %246 = dma.done.wait [#allocation4], 256  }
  0x1a   :  { %247 = vsyncadd [#allocation4], 4294967040 }
  0x1b   :  { %248 = dma.done.wait [#allocation7], 384  }
  0x1c   :  { %249 = vsyncadd [#allocation7], 4294966912  ;;  %vm56_vm0 = vcmask 1040384   ;;  %vm49_vm1 = vcmask 138240   ;;  %v48_v0 = vld [vmem:[#allocation6 + $0x10] sm:$0x1]  ;;  %v138_v5 = vstv %s300_s2 }
  0x1d   :  { %v47_v1 = vld [vmem:[#allocation6 + $0x8] sm:$0xff]  ;;  %172 = vmatprep.subr.msk.mxu0 %vm56_vm0, %v48_v0  ;;  %v44_v2 = vld [vmem:[#allocation3] sm:$0xff]  ;;  %v46_v3 = vld [vmem:[#allocation6] sm:$0xff]  ;;  %vm143_vm3 = vcmask 261120   ;;  %s256_s24 = smov [#allocation8]  }
  0x1e   :  { %173 = vmatpush3.msk.msra.mxu0 %vm56_vm0, %v48_v0  ;;  %178 = vmatprep.mubr.msk.f32.mxu0 %vm49_vm1, %v44_v2  ;;  %v45_v4 = vld [vmem:[#allocation3 + $0x8] sm:$0xff]  ;;  %s151_s25 = sshll.u32 %s256_s24, 4  ;;  %s152_s25 = int_to_ptr.vmem [resolvable:$true] %s151_s25 }
  0x1f   :  { %174 = vmatprep.subr.mxu0 %v47_v1  ;;  %s226_s26 = scalar_lea.vmem %s152_s25, 256  ;;  %p231_p11 = scmp.lt.s32.totalorder %s152_s25, %s152_s25 }
  0x20   :  { %175 = vmatpush3.msra.mxu0 %v47_v1  ;;  %p227_p10 = scmp.ne.s32.totalorder %s152_s25, %s226_s26  ;;  %p232_p12 = scmp.lt.s32.totalorder %s226_s26, %s226_s26 }
  0x21   :  { %176 = vmatprep.subr.mxu0 %v46_v3 }
  0x22   :  { %177 = vmatpush3.msra.mxu0 %v46_v3  ;;  %p233_p13 = por %p232_p12, %p231_p11 }
  0x23   :  { %179 = vmatmul.mubr.msk.f32.vlgmr.msra.gmra.mxu0 %vm49_vm1, %v45_v4 }
  0x24   :  { %p234_p0 = pnand %p233_p13, %p227_p10 }
  0xe3   :  { %v180_v6 = vpop.f32.mrf.mxu0 }
  0xe4   :  { %vm137_vm2 = vcmp.gt.f32.partialorder %v180_v6, 0.0  ;;  %v140_v7 = vmul.f32 %v180_v6, %v138_v5 }
  0xe5   :  { %v126_v8 = vpop.f32.mrf.mxu0 }
  0xe6   :  { %vm136_vm4 = vcmp.gt.f32.partialorder %v126_v8, 0.0  ;;  %v139_v9 = vmul.f32 %v138_v5, %v126_v8  ;;  %v142_v10 = vsel %vm137_vm2, %v180_v6, %v140_v7 }
  0xe7   :  { %145 = vst.msk [vmem:[#allocation8 + $0x8] sm:$0xff] %vm143_vm3, %v142_v10 }
  0xe8   :  { %v141_v11 = vsel %vm136_vm4, %v126_v8, %v139_v9 }
  0xe9   :  { %144 = vst.msk [vmem:[#allocation8] sm:$0xff] %vm143_vm3, %v141_v11 }
  0xea   :  { %237 = shalt.err (!%p234_p0)
}
  0xeb   :  { %157 = dma.vmem_to_hbm [thread:$0]  %s152_s25, 256, %s301_s3, [#allocation5], %s253_s15, %s253_s15, %s254_s16  }
  0xec   :  { %250 = dma.done.wait [#allocation5], 256  }
  0xed   :  { %251 = vsyncadd [#allocation5], 4294967040 }
  0xee   :  { %161 = vsyncpa [#allocation4], 1 }
  0xef   :  { %162 = vsyncpa [#allocation7], 1 }
  0xf0   :  { %163 = vsyncpa [#allocation5], 1 }

</bundles_post_ra>
